<compile_context>
chip_gen: v7x
topology: tpu7x:2x2x1
jax: 0.10.0
libtpu: 0.0.40
codegen_flags: <defaults>
</compile_context>

<pallas_src>
import jax
import jax.numpy as jnp
from jax.experimental import pallas as pl
from jax.experimental.pallas import tpu as pltpu

EPS = 1e-5  # nn.InstanceNorm2d default eps
ROWS_PER_BLOCK = 8  # one full sublane group per block


def _instance_norm_kernel(x_ref, w_ref, b_ref, o_ref):
    # x_ref: (8, HW) block of independent instances (rows).
    x = x_ref[...].astype(jnp.float32)
    inv_hw = jnp.float32(1.0 / x.shape[-1])

    # Single pass over x: mean and E[x^2] (biased variance, as PyTorch).
    mean = jnp.sum(x, axis=-1, keepdims=True) * inv_hw
    mean_sq = jnp.sum(x * x, axis=-1, keepdims=True) * inv_hw
    var = mean_sq - mean * mean
    inv = jax.lax.rsqrt(var + EPS)

    # Fused affine: y = ((x - mean) * inv) * w + b  ==  x * a + c
    w = w_ref[...].astype(jnp.float32)  # (8, 1) per-row gamma
    b = b_ref[...].astype(jnp.float32)  # (8, 1) per-row beta
    a = inv * w
    c = b - mean * a
    o_ref[...] = (x * a + c).astype(o_ref.dtype)


def instance_norm_2d(x, weight, bias):
    """Affine InstanceNorm2d over NCHW input using a Pallas TPU kernel."""
    B, C, H, W = x.shape
    hw = H * W
    rows = B * C
    rows_padded = ((rows + ROWS_PER_BLOCK - 1) // ROWS_PER_BLOCK) * ROWS_PER_BLOCK

    # (B, C, H, W) -> (B*C, HW): row r corresponds to (b = r // C, c = r % C).
    x2 = x.reshape(rows, hw)
    # Per-row affine params, pre-shaped to (rows, 1) so the kernel does no
    # reshapes / cross-lane moves.
    w_rows = jnp.tile(weight.astype(jnp.float32), B).reshape(rows, 1)
    b_rows = jnp.tile(bias.astype(jnp.float32), B).reshape(rows, 1)

    if rows_padded != rows:
        pad = rows_padded - rows
        x2 = jnp.pad(x2, ((0, pad), (0, 0)))
        w_rows = jnp.pad(w_rows, ((0, pad), (0, 0)))
        b_rows = jnp.pad(b_rows, ((0, pad), (0, 0)))

    # TODO(synk): for very large H*W, tile the HW axis with an accumulate-then-
    # normalize two-axis grid; full-HW blocks are kept here since H*W for
    # MobileNetV3-sized inputs fits comfortably in scoped VMEM.
    out = pl.pallas_call(
        _instance_norm_kernel,
        out_shape=jax.ShapeDtypeStruct((rows_padded, hw), x.dtype),
        grid_spec=pltpu.PrefetchScalarGridSpec(
            num_scalar_prefetch=0,
            grid=(rows_padded // ROWS_PER_BLOCK,),
            in_specs=[
                pl.BlockSpec((ROWS_PER_BLOCK, hw), lambda i: (i, 0)),
                pl.BlockSpec((ROWS_PER_BLOCK, 1), lambda i: (i, 0)),
                pl.BlockSpec((ROWS_PER_BLOCK, 1), lambda i: (i, 0)),
            ],
            out_specs=pl.BlockSpec((ROWS_PER_BLOCK, hw), lambda i: (i, 0)),
        ),
        compiler_params=pltpu.CompilerParams(
            dimension_semantics=("parallel",),
        ),
    )(x2, w_rows, b_rows)

    return out[:rows].reshape(B, C, H, W)


class MobileNetV3BasePallas:
    """JAX/Pallas port of MobileNetV3Base (base-class forward only)."""

    def __init__(self, in_channels=3, instance_norm_first=True, key=None):
        self.instance_norm_first = instance_norm_first
        if instance_norm_first:
            # nn.InstanceNorm2d(affine=True) params.  PyTorch inits weight=1,
            # bias=0; perturb deterministically so the affine path is exercised.
            if key is None:
                key = jax.random.PRNGKey(0)
            kw, kb = jax.random.split(key)
            self.in_weight = 1.0 + 0.1 * jax.random.normal(kw, (in_channels,), jnp.float32)
            self.in_bias = 0.1 * jax.random.normal(kb, (in_channels,), jnp.float32)
        else:
            self.in_weight = None
            self.in_bias = None

    def extract_features(self, x):
        # TODO(synk): abstract in the base class (raises NotImplementedError);
        # subclasses supply the MobileNetV3 trunk.  Return x so the normalized
        # tensor can be inspected.
        return x

    def forward(self, x):
        if self.instance_norm_first:
            x = instance_norm_2d(x, self.in_weight, self.in_bias)
        return self.extract_features(x)


def _reference_instance_norm(x, w, b):
    xf = x.astype(jnp.float32)
    mean = jnp.mean(xf, axis=(2, 3), keepdims=True)
    var = jnp.mean((xf - mean) ** 2, axis=(2, 3), keepdims=True)
    y = (xf - mean) * jax.lax.rsqrt(var + EPS)
    return (y * w.reshape(1, -1, 1, 1) + b.reshape(1, -1, 1, 1)).astype(x.dtype)


if __name__ == "__main__":
    key = jax.random.PRNGKey(0)
    kx, kp = jax.random.split(key)

    B, C, H, W = 2, 3, 16, 16  # in_channels=3 (module default), small spatial
    x = jax.random.normal(kx, (B, C, H, W), jnp.float32)

    model = MobileNetV3BasePallas(in_channels=C, instance_norm_first=True, key=kp)

    out = model.forward(x)
    out = jax.block_until_ready(out)

    ref = _reference_instance_norm(x, model.in_weight, model.in_bias)
    assert out.shape == x.shape
    assert jnp.allclose(out, ref, atol=1e-4, rtol=1e-4), "mismatch vs. reference"

    print("KERNEL_OK")
</pallas_src>

<mosaic_0001>
module attributes {stable_mosaic.version = 11 : i64} {
  func.func @_instance_norm_kernel(%arg0: i32, %arg1: memref<8x256xf32, #tpu.memory_space<vmem>>, %arg2: memref<8x1xf32, #tpu.memory_space<vmem>>, %arg3: memref<8x1xf32, #tpu.memory_space<vmem>>, %arg4: memref<8x256xf32, #tpu.memory_space<vmem>>) attributes {dimension_semantics = [#tpu.dimension_semantics<parallel>], iteration_bounds = array<i64: 1>, scalar_prefetch = 0 : i64, scratch_operands = 0 : i64, tpu.core_type = #tpu.core_type<tc>, window_params = [{transform_indices = @transform_0, window_bounds = array<i64: 8, 256>}, {transform_indices = @transform_1, window_bounds = array<i64: 8, 1>}, {transform_indices = @transform_2, window_bounds = array<i64: 8, 1>}, {transform_indices = @transform_3, window_bounds = array<i64: 8, 256>}]} {
    %c0 = arith.constant 0 : index
    %c0_0 = arith.constant 0 : index
    %0 = vector.load %arg1[%c0, %c0_0] : memref<8x256xf32, #tpu.memory_space<vmem>>, vector<8x256xf32>
    %cst = arith.constant dense<0.000000e+00> : vector<8xf32>
    %1 = vector.multi_reduction <add>, %0, %cst [1] : vector<8x256xf32> to vector<8xf32>
    %2 = vector.shape_cast %1 : vector<8xf32> to vector<8x1xf32>
    %cst_1 = arith.constant 3.906250e-03 : f32
    %3 = vector.broadcast %cst_1 : f32 to vector<8x1xf32>
    %4 = arith.mulf %2, %3 : vector<8x1xf32>
    %5 = arith.mulf %0, %0 : vector<8x256xf32>
    %cst_2 = arith.constant dense<0.000000e+00> : vector<8xf32>
    %6 = vector.multi_reduction <add>, %5, %cst_2 [1] : vector<8x256xf32> to vector<8xf32>
    %7 = vector.shape_cast %6 : vector<8xf32> to vector<8x1xf32>
    %cst_3 = arith.constant 3.906250e-03 : f32
    %8 = vector.broadcast %cst_3 : f32 to vector<8x1xf32>
    %9 = arith.mulf %7, %8 : vector<8x1xf32>
    %10 = arith.mulf %4, %4 : vector<8x1xf32>
    %11 = arith.subf %9, %10 : vector<8x1xf32>
    %cst_4 = arith.constant 9.99999974E-6 : f32
    %12 = vector.broadcast %cst_4 : f32 to vector<8x1xf32>
    %13 = arith.addf %11, %12 : vector<8x1xf32>
    %14 = math.rsqrt %13 : vector<8x1xf32>
    %c0_5 = arith.constant 0 : index
    %c0_6 = arith.constant 0 : index
    %15 = vector.load %arg2[%c0_5, %c0_6] : memref<8x1xf32, #tpu.memory_space<vmem>>, vector<8x1xf32>
    %c0_7 = arith.constant 0 : index
    %c0_8 = arith.constant 0 : index
    %16 = vector.load %arg3[%c0_7, %c0_8] : memref<8x1xf32, #tpu.memory_space<vmem>>, vector<8x1xf32>
    %17 = arith.mulf %14, %15 : vector<8x1xf32>
    %18 = arith.mulf %4, %17 : vector<8x1xf32>
    %19 = arith.subf %16, %18 : vector<8x1xf32>
    %20 = vector.broadcast %17 : vector<8x1xf32> to vector<8x256xf32>
    %21 = arith.mulf %0, %20 : vector<8x256xf32>
    %22 = vector.broadcast %19 : vector<8x1xf32> to vector<8x256xf32>
    %23 = arith.addf %21, %22 : vector<8x256xf32>
    %c0_9 = arith.constant 0 : index
    %c0_10 = arith.constant 0 : index
    %24 = vector.load %arg4[%c0_9, %c0_10] : memref<8x256xf32, #tpu.memory_space<vmem>>, vector<8x256xf32>
    tpu.vector_store %arg4[%c0_9, %c0_10], %23 {strides = array<i32>} : memref<8x256xf32, #tpu.memory_space<vmem>>, vector<8x256xf32>,
    return
  }
  func.func @transform_0(%arg0: i32) -> (i32, i32) {
    %c0_i32 = arith.constant 0 : i32
    %c0_i32_0 = arith.constant 0 : i32
    return %arg0, %c0_i32 : i32, i32
  }
  func.func @transform_1(%arg0: i32) -> (i32, i32) {
    %c0_i32 = arith.constant 0 : i32
    %c0_i32_0 = arith.constant 0 : i32
    return %arg0, %c0_i32 : i32, i32
  }
  func.func @transform_2(%arg0: i32) -> (i32, i32) {
    %c0_i32 = arith.constant 0 : i32
    %c0_i32_0 = arith.constant 0 : i32
    return %arg0, %c0_i32 : i32, i32
  }
  func.func @transform_3(%arg0: i32) -> (i32, i32) {
    %c0_i32 = arith.constant 0 : i32
    %c0_i32_0 = arith.constant 0 : i32
    return %arg0, %c0_i32 : i32, i32
  }
}

</mosaic_0001>

<bundles_post_ra>
// kernel: tpu_custom_call.1
= control target key start
LH: loop header
LB: loop body
LE: loop exit
PB: predicated region body
PF: predicated region fallthrough
CT: control target
= control target key end

     0   :  { %s142_s0 = inlined_call_operand.vmem [shape: f32[8,256], index: 0, kind: input, shape index: {}]   ;;  %s143_s1 = inlined_call_operand.vmem [shape: f32[8,1], index: 1, kind: input, shape index: {}]   ;;  %s144_s2 = inlined_call_operand.vmem [shape: f32[8,1], index: 2, kind: input, shape index: {}]   ;;  %s145_s3 = inlined_call_operand.hbm [shape: f32[8,256], index: 3, kind: output, shape index: {}]  }
   0x1   :  { %v15_v0 = vld [vmem:[%s142_s0] sm:$0xff]  ;;  %v16_v1 = vld [vmem:[%s142_s0 + $0x8] sm:$0xff] }
   0x2   :  { %8 = vsyncpa [#allocation3], 0  ;;  %v17_v2 = vadd.f32 %v16_v1, %v15_v0  ;;  %v21_v3 = vmul.f32 %v15_v0, %v15_v0  ;;  %v22_v4 = vmul.f32 %v16_v1, %v16_v1  ;;  %v96_v6 = vmov 0   ;;  %v31_v14 = vld [vmem:[%s143_s1] sm:$0xff]  ;;  %s97_s19 = smov [#allocation2]  }
   0x3   :  { %68 = vset.pattern.permute.xlu1 %v96_v6  ;;  %69 = vset.pattern.permute.xlu0 %v96_v6  ;;  %v32_v17 = vld [vmem:[%s144_s2] sm:$0xff]  ;;  %s58_s20 = sshll.u32 %s97_s19, 4  ;;  %s59_s20 = int_to_ptr.vmem [resolvable:$true] %s58_s20 }
   0x4   :  { %18 = vadd.xlane.f32.xlu0 %v17_v2  ;;  %v23_v5 = vadd.f32 %v22_v4, %v21_v3  ;;  %s72_s1 = scalar_lea.vmem %s59_s20, 256  ;;  %p77_p1 = scmp.lt.s32.totalorder %s59_s20, %s59_s20 }
   0x5   :  { %p73_p0 = scmp.ne.s32.totalorder %s59_s20, %s72_s1  ;;  %p78_p2 = scmp.lt.s32.totalorder %s72_s1, %s72_s1 }
   0x7   :  { %p79_p3 = por %p78_p2, %p77_p1 }
   0x8   :  { %24 = vadd.xlane.f32.xlu0 %v23_v5 }
   0x9   :  { %p80_p4 = pnand %p79_p3, %p73_p0 }
  0x91   :  { %v19_v7 = vpop.xlane.xlu0 %18 }
  0x92   :  { %v20_v8 = vmul.f32 0.00390625, %v19_v7 }
  0x94   :  { %v27_v10 = vmul.f32 %v20_v8, %v20_v8 }
  0x95   :  { %v25_v9 = vpop.xlane.xlu0 %24 }
  0x96   :  { %v26_v11 = vmul.f32 0.00390625, %v25_v9 }
  0x98   :  { %v28_v12 = vsub.f32 %v26_v11, %v27_v10 }
  0x9a   :  { %v29_v13 = vadd.f32 1e-05, %v28_v12 }
  0x9c   :  { %70 = vrsqrt.f32 %v29_v13 }
  0xa6   :  { %v71_v15 = vpop.eup %70 }
  0xa7   :  { %v33_v16 = vmul.f32 %v71_v15, %v31_v14 }
  0xa9   :  { %38 = vperm.xlu1 %68, %v33_v16   ;;  %v34_v18 = vmul.f32 %v33_v16, %v20_v8 }
  0xab   :  { %v35_v19 = vsub.f32 %v32_v17, %v34_v18 }
  0xad   :  { %45 = vperm.xlu1 %68, %v35_v19  }
 0x128   :  { %v39_v20 = vpop.permute.xlu1 %38 }
 0x129   :  { %v41_v21 = vmul.f32 %v39_v20, %v15_v0  ;;  %v42_v22 = vmul.f32 %v39_v20, %v16_v1 }
 0x12c   :  { %v46_v23 = vpop.permute.xlu1 %45 }
 0x12d   :  { %v48_v24 = vadd.f32 %v46_v23, %v41_v21  ;;  %v49_v25 = vadd.f32 %v46_v23, %v42_v22 }
 0x12f   :  { %50 = vst [vmem:[#allocation2] sm:$0xff] %v48_v24  ;;  %51 = vst [vmem:[#allocation2 + $0x8] sm:$0xff] %v49_v25 }
 0x130   :  { %83 = shalt.err (!%p80_p4)
}
 0x131   :  { %s84_s22 = scalar_lea.hbm %s145_s3, 256 }
 0x132   :  { %p85_p5 = scmp.ne.s32.totalorder %s145_s3, %s84_s22  ;;  %p88_p6 = scmp.lt.u32.totalorder %s84_s22, %s145_s3 }
 0x134   :  { %p90_p7 = pnand %p88_p6, %p85_p5 }
 0x136   :  { %93 = shalt.err (!%p90_p7)
}
 0x137   :  { %61 = dma.vmem_to_hbm [thread:$0]  %s59_s20, 256, %s145_s3, [#allocation3]  }
 0x138   :  { %94 = dma.done.wait [#allocation3], 256  }
 0x139   :  { %95 = vsyncadd [#allocation3], 4294967040 }
 0x13a   :  { %65 = vsyncpa [#allocation3], 1 }

</bundles_post_ra>
